<compile_context>
chip_gen: v7x
topology: tpu7x:2x2x1
jax: 0.10.0
libtpu: 0.0.40
codegen_flags: <defaults>
</compile_context>

<pallas_src>
import functools

import jax
import jax.numpy as jnp
from jax.experimental import pallas as pl
from jax.experimental.pallas import tpu as pltpu


def _bert_self_output_kernel(h_ref,   # (TM, H) hidden_states tile   (bf16)
                             x_ref,   # (TM, H) residual tile        (bf16)
                             w_ref,   # (H, H)  dense weight, (in,out) layout (bf16, resident)
                             b_ref,   # (1, H)  dense bias            (f32)
                             g_ref,   # (1, H)  LayerNorm gamma       (f32)
                             bb_ref,  # (1, H)  LayerNorm beta        (f32)
                             o_ref,   # (TM, H) output tile
                             *, eps):
    # Dense: bf16 x bf16 on the MXU, f32 accumulate.
    h = jnp.dot(h_ref[...], w_ref[...], preferred_element_type=jnp.float32)
    h = h + b_ref[...]                                   # bias (f32)
    # Dropout: identity in eval/inference mode.
    # TODO(synk): training-mode dropout (RNG mask) intentionally omitted.
    x = h + x_ref[...].astype(jnp.float32)               # residual; LN math in f32
    # TF-style LayerNorm (epsilon inside the sqrt), matching BertLayerNorm.
    u = jnp.mean(x, axis=-1, keepdims=True)
    d = x - u
    s = jnp.mean(d * d, axis=-1, keepdims=True)
    xn = d * jax.lax.rsqrt(s + eps)                      # rsqrt -> EUP slot
    o_ref[...] = (g_ref[...] * xn + bb_ref[...]).astype(o_ref.dtype)


def prepare_bert_self_output_params(dense_w, dense_b, gamma, beta,
                                     param_dtype=jnp.bfloat16):
    """One-time (model-init) prep: cast + transpose the torch-layout (out,in)
    weight so every layer call pays zero extra HBM passes for it."""
    H = dense_b.shape[-1]
    return dict(
        w_t=jnp.asarray(dense_w, param_dtype).T,              # (in, out): kernel does h @ w_t
        b=jnp.asarray(dense_b, jnp.float32).reshape(1, H),
        gamma=jnp.asarray(gamma, jnp.float32).reshape(1, H),
        beta=jnp.asarray(beta, jnp.float32).reshape(1, H),
    )


def _choose_tm(n_rows, target=512):
    """Token-tile rows: multiple of 8, <= target, prefers an exact divisor of
    n_rows (avoids wrapper pad) and >= 2 grid steps (feeds both v7x cores)."""
    if n_rows <= 8:
        return 8
    half = ((n_rows + 1) // 2 + 7) // 8 * 8      # ceil(N/2), rounded up to x8
    cap = max(8, min(target, half))
    for tm in range(cap, 7, -8):                 # largest x8 divisor of n_rows, if any
        if n_rows % tm == 0:
            return tm
    return cap                                   # ragged tail -> wrapper pads


def bert_self_output(hidden_states, input_tensor, params, *,
                     eps=1e-12, tm_target=512,
                     compute_dtype=jnp.bfloat16, out_dtype=jnp.float32):
    """hidden_states, input_tensor: (B, S, H). params from prepare_bert_self_output_params."""
    B, S, H = hidden_states.shape
    N = B * S

    h2 = hidden_states.reshape(N, H).astype(compute_dtype)   # no-op if already bf16
    x2 = input_tensor.reshape(N, H).astype(compute_dtype)
    w_t, b2, g2, bb2 = params["w_t"], params["b"], params["gamma"], params["beta"]

    tm = _choose_tm(N, tm_target)
    n_pad = -(-N // tm) * tm
    if n_pad != N:
        # Fallback only for ragged N. Padded rows come out as beta (variance 0,
        # rsqrt(eps) finite) and are sliced off below.
        pad = n_pad - N
        h2 = jnp.pad(h2, ((0, pad), (0, 0)))
        x2 = jnp.pad(x2, ((0, pad), (0, 0)))

    grid_spec = pltpu.PrefetchScalarGridSpec(
        num_scalar_prefetch=0,
        grid=(n_pad // tm,),
        in_specs=[
            pl.BlockSpec((tm, H), lambda i: (i, 0)),                    # hidden tile
            pl.BlockSpec((tm, H), lambda i: (i, 0)),                    # residual tile
            pl.BlockSpec((H, H), lambda i: (0, 0),
                         pipeline_mode=pl.Buffered(1)),                 # weight (resident)
            pl.BlockSpec((1, H), lambda i: (0, 0),
                         pipeline_mode=pl.Buffered(1)),                 # bias
            pl.BlockSpec((1, H), lambda i: (0, 0),
                         pipeline_mode=pl.Buffered(1)),                 # gamma
            pl.BlockSpec((1, H), lambda i: (0, 0),
                         pipeline_mode=pl.Buffered(1)),                 # beta
        ],
        out_specs=pl.BlockSpec((tm, H), lambda i: (i, 0)),
    )

    # VMEM budget: double-buffered activation/out tiles + resident weight, 2x headroom.
    in_b = jnp.dtype(compute_dtype).itemsize
    out_b = jnp.dtype(out_dtype).itemsize
    est = (2 * 2 * tm * H * in_b          # h, x tiles, double-buffered
           + 2 * tm * H * out_b           # out tile, double-buffered
           + H * H * in_b                 # resident weight, single-buffered
           + 8 * H * 4)                   # bias/gamma/beta + slack
    vmem_limit = int(min(100 * 2**20, max(32 * 2**20, 2 * est)))

    out = pl.pallas_call(
        functools.partial(_bert_self_output_kernel, eps=eps),
        grid_spec=grid_spec,
        out_shape=jax.ShapeDtypeStruct((n_pad, H), out_dtype),
        compiler_params=pltpu.CompilerParams(
            dimension_semantics=("parallel",),
            vmem_limit_bytes=vmem_limit),
    )(h2, x2, w_t, b2, g2, bb2)

    if n_pad != N:
        out = out[:N]
    return out.reshape(B, S, H)


def bert_self_output_ref(hidden_states, input_tensor, dense_w, dense_b,
                         gamma, beta, eps=1e-12, matmul_dtype=None):
    """Pure-JAX reference mirroring the PyTorch forward (eval mode).
    matmul_dtype=bf16 mirrors the kernel's deliberate bf16 matmul."""
    h_in, w, x_res = hidden_states, dense_w, input_tensor
    if matmul_dtype is not None:
        h_in = h_in.astype(matmul_dtype)
        w = w.astype(matmul_dtype)
        x_res = x_res.astype(matmul_dtype)
    h = jnp.einsum('bsh,oh->bso', h_in, w,
                   preferred_element_type=jnp.float32) + dense_b
    x = h + x_res.astype(jnp.float32)
    u = x.mean(-1, keepdims=True)
    s = ((x - u) ** 2).mean(-1, keepdims=True)
    xn = (x - u) * jax.lax.rsqrt(s + eps)
    return gamma * xn + beta


if __name__ == "__main__":
    # Small synthetic config: hidden_size=128 (lane-dense), layer_norm_eps=1e-12.
    B, S, H = 2, 8, 128
    eps = 1e-12

    key = jax.random.PRNGKey(0)
    k_h, k_x, k_w, k_b = jax.random.split(key, 4)

    hidden_states = jax.random.normal(k_h, (B, S, H), dtype=jnp.float32)
    input_tensor = jax.random.normal(k_x, (B, S, H), dtype=jnp.float32)
    dense_w = 0.02 * jax.random.normal(k_w, (H, H), dtype=jnp.float32)   # torch (out, in)
    dense_b = 0.02 * jax.random.normal(k_b, (H,), dtype=jnp.float32)
    gamma = jnp.ones((H,), dtype=jnp.float32)
    beta = jnp.zeros((H,), dtype=jnp.float32)

    # One-time parameter prep (model init), not per call.
    params = prepare_bert_self_output_params(dense_w, dense_b, gamma, beta)

    out = bert_self_output(hidden_states, input_tensor, params, eps=eps)
    out = jax.block_until_ready(out)
    assert out.shape == (B, S, H) and out.dtype == jnp.float32

    # Reference matched to the kernel's bf16 matmul (tight tolerance).
    ref_bf16 = bert_self_output_ref(hidden_states, input_tensor, dense_w, dense_b,
                                    gamma, beta, eps=eps, matmul_dtype=jnp.bfloat16)
    assert jnp.allclose(out, ref_bf16, atol=2e-3, rtol=2e-3), "mismatch vs bf16-matched ref"

    # Full-f32 module reference (looser: the kernel deliberately runs bf16 inputs).
    ref_f32 = bert_self_output_ref(hidden_states, input_tensor, dense_w, dense_b,
                                   gamma, beta, eps=eps)
    assert jnp.allclose(out, ref_f32, atol=5e-2, rtol=5e-2), "mismatch vs f32 ref"

    print("KERNEL_OK")
</pallas_src>

<mosaic_0001>
module attributes {stable_mosaic.version = 11 : i64} {
  func.func @_bert_self_output_kernel(%arg0: i32, %arg1: memref<8x128xbf16, #tpu.memory_space<vmem>>, %arg2: memref<8x128xbf16, #tpu.memory_space<vmem>>, %arg3: memref<128x128xbf16, #tpu.memory_space<vmem>>, %arg4: memref<1x128xf32, #tpu.memory_space<vmem>>, %arg5: memref<1x128xf32, #tpu.memory_space<vmem>>, %arg6: memref<1x128xf32, #tpu.memory_space<vmem>>, %arg7: memref<8x128xf32, #tpu.memory_space<vmem>>) attributes {dimension_semantics = [#tpu.dimension_semantics<parallel>], iteration_bounds = array<i64: 2>, scalar_prefetch = 0 : i64, scratch_operands = 0 : i64, tpu.core_type = #tpu.core_type<tc>, window_params = [{transform_indices = @transform_0, window_bounds = array<i64: 8, 128>}, {transform_indices = @transform_1, window_bounds = array<i64: 8, 128>}, {pipeline_mode = #tpu.pipeline_mode<synchronous>, transform_indices = @transform_2, window_bounds = array<i64: 128, 128>}, {pipeline_mode = #tpu.pipeline_mode<synchronous>, transform_indices = @transform_3, window_bounds = array<i64: 1, 128>}, {pipeline_mode = #tpu.pipeline_mode<synchronous>, transform_indices = @transform_4, window_bounds = array<i64: 1, 128>}, {pipeline_mode = #tpu.pipeline_mode<synchronous>, transform_indices = @transform_5, window_bounds = array<i64: 1, 128>}, {transform_indices = @transform_6, window_bounds = array<i64: 8, 128>}]} {
    %c0 = arith.constant 0 : index
    %c0_0 = arith.constant 0 : index
    %0 = vector.load %arg1[%c0, %c0_0] : memref<8x128xbf16, #tpu.memory_space<vmem>>, vector<8x128xbf16>
    %c0_1 = arith.constant 0 : index
    %c0_2 = arith.constant 0 : index
    %1 = vector.load %arg3[%c0_1, %c0_2] : memref<128x128xbf16, #tpu.memory_space<vmem>>, vector<128x128xbf16>
    %cst = arith.constant dense<0.000000e+00> : vector<8x128xf32>
    %2 = tpu.matmul %0, %1, %cst {dimension_numbers = #tpu.dot_dimension_numbers<[1], [0], [0], [1], [0, 0, 1, 1], [], []>} : vector<8x128xbf16>, vector<128x128xbf16>, vector<8x128xf32> -> vector<8x128xf32>
    %c0_3 = arith.constant 0 : index
    %c0_4 = arith.constant 0 : index
    %3 = vector.load %arg4[%c0_3, %c0_4] : memref<1x128xf32, #tpu.memory_space<vmem>>, vector<1x128xf32>
    %4 = vector.broadcast %3 : vector<1x128xf32> to vector<8x128xf32>
    %5 = arith.addf %2, %4 : vector<8x128xf32>
    %c0_5 = arith.constant 0 : index
    %c0_6 = arith.constant 0 : index
    %6 = vector.load %arg2[%c0_5, %c0_6] : memref<8x128xbf16, #tpu.memory_space<vmem>>, vector<8x128xbf16>
    %7 = arith.extf %6 : vector<8x128xbf16> to vector<8x128xf32>
    %8 = arith.addf %5, %7 : vector<8x128xf32>
    %cst_7 = arith.constant dense<0.000000e+00> : vector<8xf32>
    %9 = vector.multi_reduction <add>, %8, %cst_7 [1] : vector<8x128xf32> to vector<8xf32>
    %10 = vector.shape_cast %9 : vector<8xf32> to vector<8x1xf32>
    %cst_8 = arith.constant 1.280000e+02 : f32
    %11 = vector.broadcast %cst_8 : f32 to vector<8x1xf32>
    %12 = arith.divf %10, %11 : vector<8x1xf32>
    %13 = vector.broadcast %12 : vector<8x1xf32> to vector<8x128xf32>
    %14 = arith.subf %8, %13 : vector<8x128xf32>
    %15 = arith.mulf %14, %14 : vector<8x128xf32>
    %cst_9 = arith.constant dense<0.000000e+00> : vector<8xf32>
    %16 = vector.multi_reduction <add>, %15, %cst_9 [1] : vector<8x128xf32> to vector<8xf32>
    %17 = vector.shape_cast %16 : vector<8xf32> to vector<8x1xf32>
    %cst_10 = arith.constant 1.280000e+02 : f32
    %18 = vector.broadcast %cst_10 : f32 to vector<8x1xf32>
    %19 = arith.divf %17, %18 : vector<8x1xf32>
    %cst_11 = arith.constant 9.99999996E-13 : f32
    %20 = vector.broadcast %cst_11 : f32 to vector<8x1xf32>
    %21 = arith.addf %19, %20 : vector<8x1xf32>
    %22 = math.rsqrt %21 : vector<8x1xf32>
    %23 = vector.broadcast %22 : vector<8x1xf32> to vector<8x128xf32>
    %24 = arith.mulf %14, %23 : vector<8x128xf32>
    %c0_12 = arith.constant 0 : index
    %c0_13 = arith.constant 0 : index
    %25 = vector.load %arg5[%c0_12, %c0_13] : memref<1x128xf32, #tpu.memory_space<vmem>>, vector<1x128xf32>
    %26 = vector.broadcast %25 : vector<1x128xf32> to vector<8x128xf32>
    %27 = arith.mulf %26, %24 : vector<8x128xf32>
    %c0_14 = arith.constant 0 : index
    %c0_15 = arith.constant 0 : index
    %28 = vector.load %arg6[%c0_14, %c0_15] : memref<1x128xf32, #tpu.memory_space<vmem>>, vector<1x128xf32>
    %29 = vector.broadcast %28 : vector<1x128xf32> to vector<8x128xf32>
    %30 = arith.addf %27, %29 : vector<8x128xf32>
    %c0_16 = arith.constant 0 : index
    %c0_17 = arith.constant 0 : index
    %31 = vector.load %arg7[%c0_16, %c0_17] : memref<8x128xf32, #tpu.memory_space<vmem>>, vector<8x128xf32>
    tpu.vector_store %arg7[%c0_16, %c0_17], %30 {strides = array<i32>} : memref<8x128xf32, #tpu.memory_space<vmem>>, vector<8x128xf32>,
    return
  }
  func.func @transform_0(%arg0: i32) -> (i32, i32) {
    %c0_i32 = arith.constant 0 : i32
    %c0_i32_0 = arith.constant 0 : i32
    return %arg0, %c0_i32 : i32, i32
  }
  func.func @transform_1(%arg0: i32) -> (i32, i32) {
    %c0_i32 = arith.constant 0 : i32
    %c0_i32_0 = arith.constant 0 : i32
    return %arg0, %c0_i32 : i32, i32
  }
  func.func @transform_2(%arg0: i32) -> (i32, i32) {
    %c0_i32 = arith.constant 0 : i32
    %c0_i32_0 = arith.constant 0 : i32
    %c0_i32_1 = arith.constant 0 : i32
    return %c0_i32, %c0_i32_0 : i32, i32
  }
  func.func @transform_3(%arg0: i32) -> (i32, i32) {
    %c0_i32 = arith.constant 0 : i32
    %c0_i32_0 = arith.constant 0 : i32
    %c0_i32_1 = arith.constant 0 : i32
    return %c0_i32, %c0_i32_0 : i32, i32
  }
  func.func @transform_4(%arg0: i32) -> (i32, i32) {
    %c0_i32 = arith.constant 0 : i32
    %c0_i32_0 = arith.constant 0 : i32
    %c0_i32_1 = arith.constant 0 : i32
    return %c0_i32, %c0_i32_0 : i32, i32
  }
  func.func @transform_5(%arg0: i32) -> (i32, i32) {
    %c0_i32 = arith.constant 0 : i32
    %c0_i32_0 = arith.constant 0 : i32
    %c0_i32_1 = arith.constant 0 : i32
    return %c0_i32, %c0_i32_0 : i32, i32
  }
  func.func @transform_6(%arg0: i32) -> (i32, i32) {
    %c0_i32 = arith.constant 0 : i32
    %c0_i32_0 = arith.constant 0 : i32
    return %arg0, %c0_i32 : i32, i32
  }
}

</mosaic_0001>

<bundles_post_ra>
// kernel: tpu_custom_call.1
= control target key start
LH: loop header
LB: loop body
LE: loop exit
PB: predicated region body
PF: predicated region fallthrough
CT: control target
= control target key end

     0   :  { %s1165_s0 = inlined_call_operand.hbm [shape: bf16[16,128], index: 0, kind: input, shape index: {}]   ;;  %s1166_s1 = inlined_call_operand.hbm [shape: bf16[16,128], index: 1, kind: input, shape index: {}]   ;;  %s1167_s2 = inlined_call_operand.hbm [shape: bf16[128,128], index: 2, kind: input, shape index: {}]   ;;  %s1168_s3 = inlined_call_operand.vmem [shape: f32[1,128], index: 3, kind: input, shape index: {}]   ;;  %s1169_s4 = inlined_call_operand.vmem [shape: f32[1,128], index: 4, kind: input, shape index: {}]   ;;  %s1170_s5 = inlined_call_operand.vmem [shape: f32[1,128], index: 5, kind: input, shape index: {}]   ;;  %s1171_s6 = inlined_call_operand.hbm [shape: f32[16,128], index: 6, kind: output, shape index: {}]  }
   0x1   :  { %1177 = sst [smem:[#allocation15_spill]] %s1167_s2 }
   0x2   :  { %11 = vsyncpa [#allocation3], 0 }
   0x3   :  { %13 = vsyncpa [#allocation3 + $0x1], 0 }
   0x4   :  { %14 = vsyncpa [#allocation6], 0 }
   0x5   :  { %16 = vsyncpa [#allocation6 + $0x1], 0 }
   0x6   :  { %17 = vsyncpa [#allocation4], 0 }
   0x7   :  { %19 = vsyncpa [#allocation4 + $0x1], 0  ;;  %s919_s21 = smov 0   ;;  %s921_s22 = smov 0  }
   0x8   :  { %s923_s23 = smov 0   ;;  %s925_s24 = smov 0  }
   0x9 LB: > { %1178 = sst [smem:[#allocation13_spill]] %s870_s23  ;;  %s940_s25 = sadd.s32 4294967295, %s874_s24   ;;  %s874_s24 = sphi %s925_s24, %s1199_s24   ;;  %s870_s23 = sphi %s923_s23, %s1196_s23   ;;  %s866_s22 = sphi %s921_s22, %s1198_s22   ;;  %s862_s21 = sphi %s919_s21, %s1197_s21  }
   0xa   : > { %s579_s26 = sadd.s32 4294967294, %s874_s24   ;;  %p45_p0 = scmp.ne.s32.totalorder %s866_s22, %s862_s21 }
   0xb   : > { %p1172_p1 = scmp.eq.s32.totalorder %s940_s25, 0  ;;  %p185_p3 = scmp.eq.s32.totalorder %s579_s26, 1 }
   0xc   : > { %p580_p5 = scmp.ge.s32.totalorder %s874_s24, 1  ;;  %p192_p7 = scmp.lt.s32.totalorder %s874_s24, 3 }
   0xd   : > { %p949_p4 = por %p1172_p1, %p45_p0  ;;  %p954_p6 = por %p185_p3, %p45_p0 }
   0xe   : > { %p959_p8 = pnand %p580_p5, %p192_p7  ;;  %s876_s30 = smov [#allocation7]  }
   0xf   : > { %s1179_s27 = scalar_select %p949_p4, 1, 0 }
  0x10   : > { %s1180_s28 = scalar_select %p954_p6, 1, 0 }
  0x11   : > { %s1181_s29 = scalar_select %p959_p8, 1, 0 }
  0x12   : > { %s204_s7 = sshll.u32 %s876_s30, 4  ;;  %p646_p9 = pneg %p959_p8  ;;  %s963_s7 = int_to_ptr.vmem [resolvable:$true] %s204_s7 }
  0x13   : > { %s975_s9 = sadd.s32 1, %s874_s24   ;;  %s32_s10 = sadd.s32 1, %s870_s23 }
  0x14   : > { %p970_p11 = pnand %p646_p9, %p1172_p1  ;;  %s29_s11 = ssub.s32 %s874_s24, %s975_s9 }
  0x15   : > { %s1183_s2 = sld [smem:[#allocation15_spill]] }
  0x16   : > { %p714_p13 = pneg %p970_p11 }
  0x1b   : > { %s712_s14 = scalar_lea.hbm %s1183_s2, 1024 }
  0x1c   : > { %p713_p12 = scmp.ne.s32.totalorder %s1183_s2, %s712_s14  ;;  %p719_p5 = scmp.lt.u32.totalorder %s712_s14, %s1183_s2 }
  0x1e   : > { %p715_p0 = pnand %p714_p13, %p713_p12 }
  0x20   : > { %p716_p3 = pneg %p715_p0 }
  0x22   : > { %p721_p7 = pnand %p719_p5, %p716_p3 }
  0x24   : > { %724 = shalt.err (!%p721_p7)
}
  0x25   : > { %s725_s19 = scalar_lea.vmem %s963_s7, 1024  ;;  %p733_p2 = scmp.lt.s32.totalorder %s963_s7, %s963_s7 }
  0x26   : > { %p726_p9 = scmp.ne.s32.totalorder %s963_s7, %s725_s19  ;;  %p734_p6 = scmp.lt.s32.totalorder %s725_s19, %s725_s19 }
  0x28   : > { %p728_p10 = pnand %p726_p9, %p714_p13  ;;  %p735_p4 = por %p734_p6, %p733_p2 }
  0x2a   : > { %p729_p1 = pneg %p728_p10 }
  0x2c   : > { %p736_p8 = pnand %p735_p4, %p729_p1 }
  0x2e   : > { %739 = shalt.err (!%p736_p8)
}
  0x2f   : > { %s877_s20 = smov 64   ;;  %s878_s26 = smov 4  }
  0x30   : > { %649 = dma.hbm_to_vmem [thread:$0]  (!%p970_p11), %s1183_s2, 1024, %s963_s7, [#allocation6], %s877_s20, %s877_s20, %s878_s26  }
  0x31   : > { %p30_p2 = scmp.eq.s32.totalorder %s29_s11, 0  ;;  %p39_p1 = scmp.ne.s32.totalorder %s870_s23, %s866_s22 }
  0x32   : > { %p40_p4 = scmp.eq.s32.totalorder %s874_s24, 0  ;;  %p662_p6 = scmp.lt.s32.totalorder %s874_s24, 2 }
  0x33   : > { %s1006_s13 = scalar_select %p30_p2, %s870_s23, %s32_s10  }
  0x34   : > { %p41_p8 = por %p40_p4, %p39_p1  ;;  %p1185_p10 = scmp.eq.s32.totalorder %s940_s25, 1 }
  0x35   : > { %1184 = sst [smem:[#allocation14_spill]] %s1006_s13  ;;  %s227_s15 = sand.u32 1, %s870_s23  }
  0x36   : > { %p1010_p12 = por %p1185_p10, %p39_p1  ;;  %s584_s16 = sshll.u32 %s874_s24, 6 }
  0x37   : > { %s1016_s17 = sshll.u32 %s227_s15, 2  ;;  %s1021_s7 = scalar_lea.hbm %s1165_s0, %s584_s16 }
  0x38   : > { %s1186_s14 = scalar_select %p1010_p12, 1, 0 }
  0x39   : > { %s231_s10 = scalar_lea.vmem [#allocation2], %s1016_s17  ;;  %p1024_p11 = pnand %p662_p6, %p41_p8 }
  0x3a   : > { %s238_s11 = sshll.u32 %s231_s10, 4  ;;  %s1033_s30 = scalar_lea.hbm %s1166_s1, %s584_s16  ;;  %s1028_s11 = int_to_ptr.vmem [resolvable:$true] %s238_s11 }
  0x3b   : > { %s228_s12 = scalar_lea.sflag [#allocation3], %s227_s15  ;;  %s740_s8 = scalar_lea.hbm %s1021_s7, 64 }
  0x3c   : > { %p741_p13 = scmp.ne.s32.totalorder %s1021_s7, %s740_s8  ;;  %p742_p0 = pneg %p1024_p11 }
  0x3d   : > { %s745_s2 = scalar_lea.hbm %s1165_s0, 128  ;;  %p746_p7 = scmp.lt.u32.totalorder %s1021_s7, %s1165_s0 }
  0x3e   : > { %p743_p3 = pnand %p742_p0, %p741_p13  ;;  %p747_p9 = scmp.lt.u32.totalorder %s745_s2, %s740_s8 }
  0x3f   : > { %p749_p1 = scmp.lt.u32.totalorder %s740_s8, %s1021_s7 }
  0x40   : > { %p744_p5 = pneg %p743_p3  ;;  %p748_p2 = por %p747_p9, %p746_p7 }
  0x42   : > { %p750_p4 = por %p749_p1, %p748_p2 }
  0x44   : > { %p751_p6 = pnand %p750_p4, %p744_p5 }
  0x46   : > { %754 = shalt.err (!%p751_p6)
}
  0x47   : > { %s755_s15 = scalar_lea.vmem %s1028_s11, 64  ;;  %s879_s16 = smov [#allocation2]  }
  0x48   : > { %p756_p8 = scmp.ne.s32.totalorder %s1028_s11, %s755_s15  ;;  %s760_s20 = sshll.u32 %s879_s16, 4  ;;  %s761_s20 = int_to_ptr.vmem [resolvable:$false] %s760_s20 }
  0x49   : > { %s762_s23 = scalar_lea.vmem %s761_s20, 128  ;;  %p763_p3 = scmp.lt.s32.totalorder %s1028_s11, %s761_s20 }
  0x4a   : > { %p758_p10 = pnand %p756_p8, %p742_p0  ;;  %p764_p7 = scmp.lt.s32.totalorder %s762_s23, %s755_s15 }
  0x4c   : > { %p759_p13 = pneg %p758_p10  ;;  %p765_p9 = por %p764_p7, %p763_p3 }
  0x4e   : > { %p766_p2 = pnand %p765_p9, %p759_p13 }
  0x50   : > { %769 = shalt.err (!%p766_p2)
}
  0x51   : > { %653 = dma.hbm_to_vmem [thread:$0]  (!%p1024_p11), %s1021_s7, 64, %s1028_s11, %s228_s12  }
  0x52   : > { %s245_s2 = sand.u32 1, %s874_s24   ;;  %s249_s13 = scalar_lea.vmem [#allocation5], %s1016_s17 }
  0x53   : > { %s256_s26 = sshll.u32 %s249_s13, 4  ;;  %s246_s8 = scalar_lea.sflag [#allocation6], %s245_s2  ;;  %s257_s26 = int_to_ptr.vmem [resolvable:$true] %s256_s26 }
  0x54   : > { %s770_s18 = scalar_lea.hbm %s1033_s30, 64  ;;  %s775_s16 = scalar_lea.hbm %s1166_s1, 128 }
  0x55   : > { %p771_p5 = scmp.ne.s32.totalorder %s1033_s30, %s770_s18  ;;  %p776_p6 = scmp.lt.u32.totalorder %s1033_s30, %s1166_s1 }
  0x56   : > { %p777_p8 = scmp.lt.u32.totalorder %s775_s16, %s770_s18  ;;  %p779_p13 = scmp.lt.u32.totalorder %s770_s18, %s1033_s30 }
  0x57   : > { %p773_p1 = pnand %p771_p5, %p742_p0 }
  0x58   : > { %p778_p10 = por %p777_p8, %p776_p6 }
  0x59   : > { %p774_p4 = pneg %p773_p1 }
  0x5a   : > { %p780_p3 = por %p779_p13, %p778_p10 }
  0x5c   : > { %p781_p7 = pnand %p780_p3, %p774_p4 }
  0x5e   : > { %784 = shalt.err (!%p781_p7)
}
  0x5f   : > { %s785_s17 = scalar_lea.vmem %s257_s26, 64  ;;  %s880_s7 = smov [#allocation5]  }
  0x60   : > { %p786_p9 = scmp.ne.s32.totalorder %s257_s26, %s785_s17  ;;  %s790_s11 = sshll.u32 %s880_s7, 4  ;;  %s791_s11 = int_to_ptr.vmem [resolvable:$false] %s790_s11 }
  0x61   : > { %s792_s12 = scalar_lea.vmem %s791_s11, 128  ;;  %p793_p1 = scmp.lt.s32.totalorder %s257_s26, %s791_s11 }
  0x62   : > { %p788_p2 = pnand %p786_p9, %p742_p0  ;;  %p794_p12 = scmp.lt.s32.totalorder %s792_s12, %s785_s17 }
  0x64   : > { %p789_p5 = pneg %p788_p2  ;;  %p795_p6 = por %p794_p12, %p793_p1 }
  0x66   : > { %p796_p8 = pnand %p795_p6, %p789_p5 }
  0x68   : > { %799 = shalt.err (!%p796_p8)
}
  0x69   : > { %656 = dma.hbm_to_vmem [thread:$0]  (!%p1024_p11), %s1033_s30, 64, %s257_s26, %s246_s8  }
  0x6a   : > { %p1188_p4 = scmp.ne.s32.totalorder %s1181_s29, 0 }
  0x6b   : > { %s1084_s2 = sand.u32 (!%p1188_p4), 1, %s866_s22   ;;  %p1189_p12 = scmp.ne.s32.totalorder (!%p1188_p4), %s1179_s27, 0 }
  0x6c   : > { %265 = sbr.rel (%p1188_p4) target bundleno = 696 (0x2b8), region = 44  ;;  %s588_s13 = sshll.u32 (!%p1188_p4), %s1084_s2, 2 }
  0x6d   : > { %s268_s18 = scalar_lea.sflag (!%p1188_p4), [#allocation3], %s1084_s2  ;;  %s1088_s10 = scalar_lea.vmem (!%p1188_p4), [#allocation2], %s588_s13 }
  0x73   : > { %845 = dma.done.wait (%p1189_p12), %s268_s18, 64  }
  0x74   : > { %847 = vsyncadd (%p1189_p12), %s268_s18, 4294967232  ;;  %s276_s19 = sand.u32 1, %s940_s25   ;;  %s1095_s30 = scalar_lea.vmem [#allocation5], %s588_s13 }
  0x75   : > { %s277_s29 = scalar_lea.sflag [#allocation6], %s276_s19 }
  0x76   : > { %849 = dma.done.wait (%p1189_p12), %s277_s29, 64  }
  0x77   : > { %851 = vsyncadd (%p1189_p12), %s277_s29, 4294967232  ;;  %p1190_p11 = scmp.eq.s32.totalorder %s940_s25, 0 }
  0x79   : > { %853 = dma.done.wait (%p1190_p11), [#allocation6], 1024   ;;  %p1191_p0 = pmov %p1190_p11 }
  0x7a   : > { %v881_v0 = vmov 0.0   ;;  %vm882_vm0 = vmmov 0   ;;  %v702_v1 = vld [vmem:[#allocation7] sm:$0xff]   ;;  %v703_v2 = vld [vmem:[#allocation7 + $0x8] sm:$0xff]   ;;  %v704_v3 = vld [vmem:[#allocation7 + $0x10] sm:$0xff]   ;;  %s591_s8 = sshll.u32 %s1084_s2, 3 }
  0x7b   : > { %855 = vsyncadd (%p1191_p0), [#allocation6], 4294966272  ;;  %616 = vmatprep.subr.bf16.mxu0 %v881_v0  ;;  %632 = vmatprep.mubr.msk.bf16.mxu0 %vm882_vm0, %v881_v0  ;;  %v705_v4 = vld [vmem:[#allocation7 + $0x18] sm:$0xff]   ;;  %v706_v5 = vld [vmem:[#allocation7 + $0x20] sm:$0xff]   ;;  %s604_s17 = sshll.u32 %s940_s25, 7  ;;  %s317_s7 = scalar_lea.vmem [#allocation8], %s591_s8 }
  0x7c   : > { %617 = vmatpush3.bf16.msra.mxu0 %v702_v1  ;;  %v707_v6 = vld [vmem:[#allocation7 + $0x28] sm:$0xff]   ;;  %v708_v7 = vld [vmem:[#allocation7 + $0x30] sm:$0xff]   ;;  %v709_v8 = vld [vmem:[#allocation7 + $0x38] sm:$0xff]   ;;  %s477_s11 = sshll.u32 %s317_s7, 4  ;;  %s1121_s18 = scalar_lea.hbm %s1171_s6, %s604_s17  ;;  %s1123_s11 = int_to_ptr.vmem [resolvable:$true] %s477_s11 }
  0x7d   : > { %618 = vmatprep.subr.bf16.mxu0 %v881_v0  ;;  %v319_v9 = vld [vmem:[%s1088_s10] sm:$0xf]  ;;  %v431_v10 = vld [vmem:[%s1095_s30] sm:$0xf]  ;;  %s464_s10 = scalar_lea.sflag [#allocation4], %s1084_s2  ;;  %s800_s19 = scalar_lea.vmem %s1123_s11, 128 }
  0x7e   : > { %v592_v11 = vld [vmem:[%s1168_s3] ss:$0 sm:$0xff]  ;;  %v432_v12 = vunpack.c.l.bf16 %v431_v10  ;;  %p801_p10 = scmp.ne.s32.totalorder %s1123_s11, %s800_s19  ;;  %p1192_p13 = scmp.ne.s32.totalorder %s1186_s14, 0 }
  0x7f   : > { %v601_v27 = vld [vmem:[%s1169_s4] ss:$0 sm:$0xff]  ;;  %s883_s25 = smov [#allocation8]  }
  0x80   : > { %619 = vmatpush3.bf16.msra.mxu0 %v703_v2  ;;  %v602_v29 = vld [vmem:[%s1170_s5] ss:$0 sm:$0xff]  ;;  %p802_p3 = pnand %p801_p10, %p1192_p13  ;;  %s804_s29 = sshll.u32 %s883_s25, 4  ;;  %s805_s29 = int_to_ptr.vmem [resolvable:$false] %s804_s29 }
  0x81   : > { %620 = vmatprep.subr.bf16.mxu0 %v881_v0  ;;  %s806_s30 = scalar_lea.vmem %s805_s29, 256  ;;  %p807_p9 = scmp.lt.s32.totalorder %s1123_s11, %s805_s29 }
  0x82   : > { %p803_p7 = pneg %p802_p3  ;;  %p808_p2 = scmp.lt.s32.totalorder %s806_s30, %s800_s19 }
  0x84   : > { %621 = vmatpush3.bf16.msra.mxu0 %v704_v3  ;;  %p809_p5 = por %p808_p2, %p807_p9 }
  0x85   : > { %622 = vmatprep.subr.bf16.mxu0 %v881_v0 }
  0x86   : > { %p810_p1 = pnand %p809_p5, %p803_p7 }
  0x88   : > { %623 = vmatpush3.bf16.msra.mxu0 %v705_v4 }
  0x89   : > { %624 = vmatprep.subr.bf16.mxu0 %v881_v0 }
  0x8c   : > { %625 = vmatpush3.bf16.msra.mxu0 %v706_v5 }
  0x8d   : > { %626 = vmatprep.subr.bf16.mxu0 %v881_v0 }
  0x90   : > { %627 = vmatpush3.bf16.msra.mxu0 %v707_v6 }
  0x91   : > { %628 = vmatprep.subr.bf16.mxu0 %v881_v0 }
  0x94   : > { %629 = vmatpush3.bf16.msra.mxu0 %v708_v7 }
  0x95   : > { %630 = vmatprep.subr.bf16.mxu0 %v881_v0 }
  0x98   : > { %631 = vmatpush3.bf16.msra.mxu0 %v709_v8 }
  0x9b   : > { %633 = vmatmul.mubr.bf16.vlgmr.msra.gmra.mrb[0].mxu0 %v319_v9 }
 0x16e   : > { %v425_v13 = vpop.f32.mrb[0].mxu0 }
 0x16f   : > { %v426_v14 = vadd.f32 %v592_v11, %v425_v13  ;;  %v634_v15 = vpop.f32.mrb[1].mxu0 }
 0x170   : > { %v428_v16 = vpop.f32.mrb[2].mxu0 }
 0x171   : > { %v635_v17 = vpop.f32.mrb[3].mxu0  ;;  %v433_v18 = vadd.f32 %v432_v12, %v426_v14 }
 0x173   : > { %434 = vadd.xlane.f32.xlu0 %v433_v18 }
 0x200   : > { %v435_v19 = vpop.xlane.xlu0 %434 }
 0x201   : > { %v437_v20 = vmul.f32 0.0078125, %v435_v19 }
 0x203   : > { %v438_v21 = vsub.f32 %v433_v18, %v437_v20 }
 0x205   : > { %v439_v22 = vmul.f32 %v438_v21, %v438_v21 }
 0x207   : > { %440 = vadd.xlane.f32.xlu0 %v439_v22 }
 0x294   : > { %v441_v23 = vpop.xlane.xlu0 %440 }
 0x295   : > { %v442_v24 = vmul.f32 0.0078125, %v441_v23 }
 0x297   : > { %v443_v25 = vadd.f32 1e-12, %v442_v24 }
 0x299   : > { %710 = vrsqrt.f32 %v443_v25 }
 0x2a3   : > { %v711_v26 = vpop.eup %710 }
 0x2a4   : > { %v445_v28 = vmul.f32 %v711_v26, %v438_v21 }
 0x2a6   : > { %v453_v30 = vmul.f32 %v601_v27, %v445_v28 }
 0x2a8   : > { %v461_v31 = vadd.f32 %v602_v29, %v453_v30 }
 0x2aa   : > { %462 = vst [vmem:[%s317_s7] sm:$0xff] %v461_v31 }
 0x2ab   : > { %813 = shalt.err (!%p810_p1)
}
 0x2ac   : > { %s814_s2 = scalar_lea.hbm %s1121_s18, 128  ;;  %s818_s8 = scalar_lea.hbm %s1171_s6, 256 }
 0x2ad   : > { %p815_p6 = scmp.ne.s32.totalorder %s1121_s18, %s814_s2  ;;  %p819_p12 = scmp.lt.u32.totalorder %s1121_s18, %s1171_s6 }
 0x2ae   : > { %p820_p11 = scmp.lt.u32.totalorder %s818_s8, %s814_s2  ;;  %p822_p10 = scmp.lt.u32.totalorder %s814_s2, %s1121_s18 }
 0x2af   : > { %p816_p8 = pnand %p815_p6, %p1192_p13 }
 0x2b0   : > { %p821_p0 = por %p820_p11, %p819_p12 }
 0x2b1   : > { %p817_p4 = pneg %p816_p8 }
 0x2b2   : > { %p823_p3 = por %p822_p10, %p821_p0 }
 0x2b4   : > { %p824_p7 = pnand %p823_p3, %p817_p4 }
 0x2b6   : > { %827 = shalt.err (!%p824_p7)
}
 0x2b7   : > { %644 = dma.vmem_to_hbm [thread:$0]  (%p1192_p13), %s1123_s11, 128, %s1121_s18, %s464_s10  }
 0x2b8 PF: > { %s489_s20 = sand.u32 1, %s862_s21   ;;  %p1193_p9 = scmp.ne.s32.totalorder %s1180_s28, 0 }
 0x2b9   : > { %p1194_p2 = scmp.ge.s32.totalorder %s874_s24, 2  ;;  %s490_s23 = scalar_lea.sflag [#allocation4], %s489_s20 }
 0x2bb   : > { %p658_p5 = pnand %p1194_p2, %p1193_p9 }
 0x2bd   : > { %857 = dma.done.wait (!%p658_p5), %s490_s23, 128  }
 0x2be   : > { %859 = vsyncadd (!%p658_p5), %s490_s23, 4294967168  ;;  %s1195_s17 = sld [smem:[#allocation13_spill]]  ;;  %s1196_s23 = sld [smem:[#allocation14_spill]] }
 0x2bf   : > { %p22_p1 = scmp.ge.s32.totalorder %s975_s9, 4   ;;  %s1197_s21 = smov %s866_s22 }
 0x2c0   : > { %s1199_s24 = smov %s975_s9 }
 0x2c1   :  { %24 = sbr.rel (!%p22_p1) target bundleno = 9 (0x9), region = 106 }
 0x2c4   : > { %s1198_s22 = smov %s1195_s17 }
 0x2c8   :  { %495 = vsyncpa [#allocation3], 1 }
 0x2c9   :  { %497 = vsyncpa [#allocation3 + $0x1], 1 }
 0x2ca   :  { %498 = vsyncpa [#allocation6], 1 }
 0x2cb   :  { %500 = vsyncpa [#allocation6 + $0x1], 1 }
 0x2cc   :  { %501 = vsyncpa [#allocation4], 1 }
 0x2cd   :  { %503 = vsyncpa [#allocation4 + $0x1], 1 }

</bundles_post_ra>
